<compile_context>
chip_gen: v7x
topology: tpu7x:2x2x1
jax: 0.10.0
libtpu: 0.0.40
codegen_flags: <defaults>
</compile_context>

<pallas_src>
import numpy as np
import jax
import jax.numpy as jnp
from jax.experimental import pallas as pl
from jax.experimental.pallas import tpu as pltpu


def _half_bilinear_matrix(dst_size, src_size):
    """A[i, k] = 0.5 * bilinear weight of source index k for destination index i.

    Matches PyTorch F.interpolate(mode='bilinear', align_corners=False):
    src = scale*(dst+0.5)-0.5 clamped at 0, upper neighbor clamped at src_size-1.
    The 0.5 from the module's '(x_emb + y_emb)/2' is folded in here for free.
    """
    scale = src_size / dst_size
    s = np.maximum(scale * (np.arange(dst_size, dtype=np.float64) + 0.5) - 0.5, 0.0)
    x0 = np.floor(s).astype(np.int64)
    x1 = np.minimum(x0 + 1, src_size - 1)
    w1 = s - x0
    w0 = 1.0 - w1
    a = np.zeros((dst_size, src_size), dtype=np.float32)
    rows = np.arange(dst_size)
    # No duplicate (row, col) pairs inside a single statement, so += is exact even
    # when x0 == x1 at the clamped boundary (total weight 0.5*(w0+w1) = 0.5).
    a[rows, x0] += (0.5 * w0).astype(np.float32)
    a[rows, x1] += (0.5 * w1).astype(np.float32)
    return a


def _pos_embed_kernel(row_ref, colt_ref, ah_ref, awt_ref, out_ref):
    # row_ref:  (sz, C)    row_embed.weight (as-is)
    # colt_ref: (C, sz)    col_embed.weight, channel-major
    # ah_ref:   (tdh, sz)  0.5-scaled bilinear weights, H axis (current H tile)
    # awt_ref:  (sz, dw)   0.5-scaled bilinear weights, W axis (transposed)
    # out_ref:  (C, tdh, dw)
    rh = jnp.dot(ah_ref[...], row_ref[...],
                 preferred_element_type=jnp.float32)           # (tdh, C)
    cw = jnp.dot(colt_ref[...], awt_ref[...],
                 preferred_element_type=jnp.float32)           # (C, dw)
    c = out_ref.shape[0]
    # Static unroll over channels (num_pos_feats; module default = 1).
    # (tdh, 1) + (1, dw) is a cheap lane-broadcast + sublane-broadcast add.
    for ci in range(c):
        out_ref[ci] = rh[:, ci:ci + 1] + cw[ci:ci + 1, :]


def position_embedding_learned(row_weight, col_weight, bs, dh, dw):
    """row_weight / col_weight: (sz, C) fp32 embedding tables. Returns (bs, C, dh, dw)."""
    sz, c = row_weight.shape
    row_w = jnp.asarray(row_weight, jnp.float32)                    # (sz, C)
    col_t = jnp.transpose(jnp.asarray(col_weight, jnp.float32))     # (C, sz)
    a_h = jnp.asarray(_half_bilinear_matrix(dh, sz))                # (dh, sz)
    a_wt = jnp.asarray(_half_bilinear_matrix(dw, sz).T)             # (sz, dw)

    # Tile destination-H so huge (dh, dw) stay inside VMEM; independent tiles.
    if dh <= 512:
        tdh = dh                 # single tile (test path — identical to verified run)
    else:
        tdh = 256                # multiple of 8; partial last tile is masked on writeback
    n_h = pl.cdiv(dh, tdh)

    pos = pl.pallas_call(
        _pos_embed_kernel,
        out_shape=jax.ShapeDtypeStruct((c, dh, dw), jnp.float32),
        grid=(n_h,),
        in_specs=[
            pl.BlockSpec((sz, c), lambda i: (0, 0)),
            pl.BlockSpec((c, sz), lambda i: (0, 0)),
            pl.BlockSpec((tdh, sz), lambda i: (i, 0)),
            pl.BlockSpec((sz, dw), lambda i: (0, 0)),
        ],
        out_specs=pl.BlockSpec((c, tdh, dw), lambda i: (0, i, 0)),
        compiler_params=pltpu.CompilerParams(
            dimension_semantics=("parallel",)),
    )(row_w, col_t, a_h, a_wt)

    # Batch "repeat" is a pure broadcast; kept lazy so downstream consumers can
    # fuse it instead of materializing bs identical HBM copies.
    return jnp.broadcast_to(pos[None], (bs, c, dh, dw))


def _reference_numpy(row_w, col_w, bs, dh, dw):
    """Independent NumPy reference of the PyTorch forward (gather-based bilinear)."""
    row_w = np.asarray(row_w, np.float32)
    col_w = np.asarray(col_w, np.float32)
    sz, c = row_w.shape
    # pos[c, y, x] = (col[x, c] + row[y, c]) / 2
    pos = (col_w[None, :, :] + row_w[:, None, :]) * 0.5          # (sz, sz, C)
    pos = np.transpose(pos, (2, 0, 1))                           # (C, sz, sz)

    def coords(dst, src_size):
        scale = src_size / dst
        s = np.maximum(scale * (np.arange(dst) + 0.5) - 0.5, 0.0)
        x0 = np.floor(s).astype(np.int64)
        x1 = np.minimum(x0 + 1, src_size - 1)
        w1 = (s - x0).astype(np.float32)
        return x0, x1, w1

    y0, y1, wy = coords(dh, sz)
    x0, x1, wx = coords(dw, sz)
    top = pos[:, y0][:, :, x0] * (1 - wx) + pos[:, y0][:, :, x1] * wx
    bot = pos[:, y1][:, :, x0] * (1 - wx) + pos[:, y1][:, :, x1] * wx
    out = top * (1 - wy[None, :, None]) + bot * wy[None, :, None]
    return np.broadcast_to(out[None], (bs, c, dh, dw))


if __name__ == "__main__":
    # Small, deterministic setup consistent with the module's shapes
    # (module defaults are num_pos_feats=1, sz=640; reduced here for the test).
    sz = 64            # embedding table size (h = w = sz)
    num_pos_feats = 4  # channels C
    bs, dh, dw = 2, 16, 16

    key = jax.random.PRNGKey(0)
    k_row, k_col = jax.random.split(key)
    # nn.init.uniform_ -> U[0, 1)
    row_weight = jax.random.uniform(k_row, (sz, num_pos_feats), dtype=jnp.float32)
    col_weight = jax.random.uniform(k_col, (sz, num_pos_feats), dtype=jnp.float32)

    out = position_embedding_learned(row_weight, col_weight, bs, dh, dw)
    out = jax.block_until_ready(out)

    ref = _reference_numpy(row_weight, col_weight, bs, dh, dw)
    np.testing.assert_allclose(np.asarray(out), ref, rtol=1e-5, atol=1e-5)

    print("KERNEL_OK")
</pallas_src>

<mosaic_0001>
module attributes {stable_mosaic.version = 11 : i64} {
  func.func @_pos_embed_kernel(%arg0: i32, %arg1: memref<64x4xf32, #tpu.memory_space<vmem>>, %arg2: memref<4x64xf32, #tpu.memory_space<vmem>>, %arg3: memref<16x64xf32, #tpu.memory_space<vmem>>, %arg4: memref<64x16xf32, #tpu.memory_space<vmem>>, %arg5: memref<4x16x16xf32, #tpu.memory_space<vmem>>) attributes {dimension_semantics = [#tpu.dimension_semantics<parallel>], iteration_bounds = array<i64: 1>, scalar_prefetch = 0 : i64, scratch_operands = 0 : i64, tpu.core_type = #tpu.core_type<tc>, window_params = [{pipeline_mode = #tpu.pipeline_mode<synchronous>, transform_indices = @transform_0, window_bounds = array<i64: 64, 4>}, {pipeline_mode = #tpu.pipeline_mode<synchronous>, transform_indices = @transform_1, window_bounds = array<i64: 4, 64>}, {transform_indices = @transform_2, window_bounds = array<i64: 16, 64>}, {pipeline_mode = #tpu.pipeline_mode<synchronous>, transform_indices = @transform_3, window_bounds = array<i64: 64, 16>}, {transform_indices = @transform_4, window_bounds = array<i64: 4, 16, 16>}]} {
    %c0 = arith.constant 0 : index
    %c0_0 = arith.constant 0 : index
    %0 = vector.load %arg3[%c0, %c0_0] : memref<16x64xf32, #tpu.memory_space<vmem>>, vector<16x64xf32>
    %c0_1 = arith.constant 0 : index
    %c0_2 = arith.constant 0 : index
    %1 = vector.load %arg1[%c0_1, %c0_2] : memref<64x4xf32, #tpu.memory_space<vmem>>, vector<64x4xf32>
    %cst = arith.constant dense<0.000000e+00> : vector<16x4xf32>
    %2 = tpu.matmul %0, %1, %cst {dimension_numbers = #tpu.dot_dimension_numbers<[1], [0], [0], [1], [0, 0, 1, 1], [], []>} : vector<16x64xf32>, vector<64x4xf32>, vector<16x4xf32> -> vector<16x4xf32>
    %c0_3 = arith.constant 0 : index
    %c0_4 = arith.constant 0 : index
    %3 = vector.load %arg2[%c0_3, %c0_4] : memref<4x64xf32, #tpu.memory_space<vmem>>, vector<4x64xf32>
    %c0_5 = arith.constant 0 : index
    %c0_6 = arith.constant 0 : index
    %4 = vector.load %arg4[%c0_5, %c0_6] : memref<64x16xf32, #tpu.memory_space<vmem>>, vector<64x16xf32>
    %cst_7 = arith.constant dense<0.000000e+00> : vector<4x16xf32>
    %5 = tpu.matmul %3, %4, %cst_7 {dimension_numbers = #tpu.dot_dimension_numbers<[1], [0], [0], [1], [0, 0, 1, 1], [], []>} : vector<4x64xf32>, vector<64x16xf32>, vector<4x16xf32> -> vector<4x16xf32>
    %6 = vector.extract_strided_slice %2 {offsets = [0, 0], sizes = [16, 1], strides = [1, 1]} : vector<16x4xf32> to vector<16x1xf32>
    %7 = vector.extract_strided_slice %5 {offsets = [0, 0], sizes = [1, 16], strides = [1, 1]} : vector<4x16xf32> to vector<1x16xf32>
    %8 = vector.broadcast %6 : vector<16x1xf32> to vector<16x16xf32>
    %9 = vector.broadcast %7 : vector<1x16xf32> to vector<16x16xf32>
    %10 = arith.addf %8, %9 : vector<16x16xf32>
    %c0_8 = arith.constant 0 : index
    %c0_9 = arith.constant 0 : index
    %c0_10 = arith.constant 0 : index
    %11 = vector.load %arg5[%c0_8, %c0_9, %c0_10] : memref<4x16x16xf32, #tpu.memory_space<vmem>>, vector<1x16x16xf32>
    %12 = vector.shape_cast %11 : vector<1x16x16xf32> to vector<16x16xf32>
    %13 = vector.shape_cast %10 : vector<16x16xf32> to vector<1x16x16xf32>
    tpu.vector_store %arg5[%c0_8, %c0_9, %c0_10], %13 {strides = array<i32>} : memref<4x16x16xf32, #tpu.memory_space<vmem>>, vector<1x16x16xf32>,
    %14 = vector.extract_strided_slice %2 {offsets = [0, 1], sizes = [16, 1], strides = [1, 1]} : vector<16x4xf32> to vector<16x1xf32>
    %15 = vector.extract_strided_slice %5 {offsets = [1, 0], sizes = [1, 16], strides = [1, 1]} : vector<4x16xf32> to vector<1x16xf32>
    %16 = vector.broadcast %14 : vector<16x1xf32> to vector<16x16xf32>
    %17 = vector.broadcast %15 : vector<1x16xf32> to vector<16x16xf32>
    %18 = arith.addf %16, %17 : vector<16x16xf32>
    %c1 = arith.constant 1 : index
    %c0_11 = arith.constant 0 : index
    %c0_12 = arith.constant 0 : index
    %19 = vector.load %arg5[%c1, %c0_11, %c0_12] : memref<4x16x16xf32, #tpu.memory_space<vmem>>, vector<1x16x16xf32>
    %20 = vector.shape_cast %19 : vector<1x16x16xf32> to vector<16x16xf32>
    %21 = vector.shape_cast %18 : vector<16x16xf32> to vector<1x16x16xf32>
    tpu.vector_store %arg5[%c1, %c0_11, %c0_12], %21 {strides = array<i32>} : memref<4x16x16xf32, #tpu.memory_space<vmem>>, vector<1x16x16xf32>,
    %22 = vector.extract_strided_slice %2 {offsets = [0, 2], sizes = [16, 1], strides = [1, 1]} : vector<16x4xf32> to vector<16x1xf32>
    %23 = vector.extract_strided_slice %5 {offsets = [2, 0], sizes = [1, 16], strides = [1, 1]} : vector<4x16xf32> to vector<1x16xf32>
    %24 = vector.broadcast %22 : vector<16x1xf32> to vector<16x16xf32>
    %25 = vector.broadcast %23 : vector<1x16xf32> to vector<16x16xf32>
    %26 = arith.addf %24, %25 : vector<16x16xf32>
    %c2 = arith.constant 2 : index
    %c0_13 = arith.constant 0 : index
    %c0_14 = arith.constant 0 : index
    %27 = vector.load %arg5[%c2, %c0_13, %c0_14] : memref<4x16x16xf32, #tpu.memory_space<vmem>>, vector<1x16x16xf32>
    %28 = vector.shape_cast %27 : vector<1x16x16xf32> to vector<16x16xf32>
    %29 = vector.shape_cast %26 : vector<16x16xf32> to vector<1x16x16xf32>
    tpu.vector_store %arg5[%c2, %c0_13, %c0_14], %29 {strides = array<i32>} : memref<4x16x16xf32, #tpu.memory_space<vmem>>, vector<1x16x16xf32>,
    %30 = vector.extract_strided_slice %2 {offsets = [0, 3], sizes = [16, 1], strides = [1, 1]} : vector<16x4xf32> to vector<16x1xf32>
    %31 = vector.extract_strided_slice %5 {offsets = [3, 0], sizes = [1, 16], strides = [1, 1]} : vector<4x16xf32> to vector<1x16xf32>
    %32 = vector.broadcast %30 : vector<16x1xf32> to vector<16x16xf32>
    %33 = vector.broadcast %31 : vector<1x16xf32> to vector<16x16xf32>
    %34 = arith.addf %32, %33 : vector<16x16xf32>
    %c3 = arith.constant 3 : index
    %c0_15 = arith.constant 0 : index
    %c0_16 = arith.constant 0 : index
    %35 = vector.load %arg5[%c3, %c0_15, %c0_16] : memref<4x16x16xf32, #tpu.memory_space<vmem>>, vector<1x16x16xf32>
    %36 = vector.shape_cast %35 : vector<1x16x16xf32> to vector<16x16xf32>
    %37 = vector.shape_cast %34 : vector<16x16xf32> to vector<1x16x16xf32>
    tpu.vector_store %arg5[%c3, %c0_15, %c0_16], %37 {strides = array<i32>} : memref<4x16x16xf32, #tpu.memory_space<vmem>>, vector<1x16x16xf32>,
    return
  }
  func.func @transform_0(%arg0: i32) -> (i32, i32) {
    %c0_i32 = arith.constant 0 : i32
    %c0_i32_0 = arith.constant 0 : i32
    %c0_i32_1 = arith.constant 0 : i32
    return %c0_i32, %c0_i32_0 : i32, i32
  }
  func.func @transform_1(%arg0: i32) -> (i32, i32) {
    %c0_i32 = arith.constant 0 : i32
    %c0_i32_0 = arith.constant 0 : i32
    %c0_i32_1 = arith.constant 0 : i32
    return %c0_i32, %c0_i32_0 : i32, i32
  }
  func.func @transform_2(%arg0: i32) -> (i32, i32) {
    %c0_i32 = arith.constant 0 : i32
    %c0_i32_0 = arith.constant 0 : i32
    return %arg0, %c0_i32 : i32, i32
  }
  func.func @transform_3(%arg0: i32) -> (i32, i32) {
    %c0_i32 = arith.constant 0 : i32
    %c0_i32_0 = arith.constant 0 : i32
    %c0_i32_1 = arith.constant 0 : i32
    return %c0_i32, %c0_i32_0 : i32, i32
  }
  func.func @transform_4(%arg0: i32) -> (i32, i32, i32) {
    %c0_i32 = arith.constant 0 : i32
    %c0_i32_0 = arith.constant 0 : i32
    %c0_i32_1 = arith.constant 0 : i32
    return %c0_i32, %arg0, %c0_i32_0 : i32, i32, i32
  }
}

</mosaic_0001>

<bundles_post_ra>
// kernel: tpu_custom_call.1
= control target key start
LH: loop header
LB: loop body
LE: loop exit
PB: predicated region body
PF: predicated region fallthrough
CT: control target
= control target key end

     0   :  { %vm28_vm0 = vcmask 523264   ;;  %v407_v5 = vmov 0.0|0.0   ;;  %vm408_vm1 = vmmov 0   ;;  %v409_v10 = vmov 0.0   ;;  %s522_s0 = inlined_call_operand.vmem [shape: f32[64,4], index: 0, kind: input, shape index: {}]   ;;  %s523_s1 = inlined_call_operand.vmem [shape: f32[4,64], index: 1, kind: input, shape index: {}]   ;;  %s524_s2 = inlined_call_operand.vmem [shape: f32[16,64], index: 2, kind: input, shape index: {}]   ;;  %s525_s3 = inlined_call_operand.vmem [shape: f32[64,16], index: 3, kind: input, shape index: {}]   ;;  %s526_s4 = inlined_call_operand.hbm [shape: f32[4,16,16], index: 4, kind: output, shape index: {}]  }
   0x1   :  { %v20_v0 = vld [vmem:[%s522_s0] sm:$0xff]  ;;  %v21_v1 = vld [vmem:[%s522_s0 + $0x8] sm:$0xff]  ;;  %v22_v2 = vld [vmem:[%s522_s0 + $0x10] sm:$0xff]  ;;  %354 = vmatprep.subr.bf16.mxu1 %v407_v5  ;;  %335 = vmatprep.mubr.msk.f32.mxu1 %vm408_vm1, %v409_v10  ;;  %v410_v11 = vmov 1   ;;  %v411_v17 = vmov 0  }
   0x2   :  { %v338_v3 = vpack.c.bf16 %v21_v1, %v20_v0  ;;  %v23_v4 = vld [vmem:[%s522_s0 + $0x18] sm:$0xff]  ;;  %v24_v7 = vld [vmem:[%s522_s0 + $0x20] sm:$0xff]  ;;  %v25_v8 = vld [vmem:[%s522_s0 + $0x28] sm:$0xff]  ;;  %377 = vset.pattern.permute.xlu1 %v410_v11  ;;  %376 = vset.pattern.permute.xlu0 %v411_v17 }
   0x3   :  { %v342_v6 = vpack.c.bf16 %v23_v4, %v22_v2  ;;  %v18_v9 = vld [vmem:[%s524_s2] sm:$0xff]  ;;  %v112_v13 = vld [vmem:[%s525_s3 + $0x8] sm:$0xff]  ;;  %v113_v15 = vld [vmem:[%s525_s3 + $0x10] sm:$0xff]  ;;  %v346_v18 = vpack.c.bf16 %v25_v8, %v24_v7 }
   0x4   :  { %339 = vmatprep.subr.bf16.mxu0 %v338_v3  ;;  %316 = vmatprep.mubr.msk.f32.mxu0 %vm28_vm0, %v18_v9  ;;  %v111_v12 = vld [vmem:[%s525_s3] sm:$0xff]  ;;  %v114_v16 = vld [vmem:[%s525_s3 + $0x18] sm:$0xff]  ;;  %v26_v19 = vld [vmem:[%s522_s0 + $0x30] sm:$0xff] }
   0x5   :  { %341 = vmatpush3.bf16.msra.mxu0 %v338_v3  ;;  %v355_v14 = vpack.c.bf16 %v112_v13, %v111_v12  ;;  %v27_v20 = vld [vmem:[%s522_s0 + $0x38] sm:$0xff]  ;;  %v358_v21 = vpack.c.bf16 %v114_v16, %v113_v15 }
   0x6   :  { %343 = vmatprep.subr.bf16.mxu0 %v342_v6 }
   0x7   :  { %356 = vmatpush3.bf16.msra.mxu1 %v355_v14 }
   0x8   :  { %9 = vsyncpa [#allocation3], 0  ;;  %357 = vmatprep.subr.bf16.mxu1 %v407_v5  ;;  %v115_v22 = vld [vmem:[%s525_s3 + $0x20] sm:$0xff]  ;;  %v116_v23 = vld [vmem:[%s525_s3 + $0x28] sm:$0xff]  ;;  %v350_v24 = vpack.c.bf16 %v27_v20, %v26_v19  ;;  %v412_v35 = vmov 2   ;;  %v413_v36 = vmov 3   ;;  %v202_v37 = vlaneseq }
   0x9   :  { %345 = vmatpush3.bf16.msra.mxu0 %v342_v6  ;;  %v361_v25 = vpack.c.bf16 %v116_v23, %v115_v22  ;;  %v117_v26 = vld [vmem:[%s525_s3 + $0x30] sm:$0xff]  ;;  %v118_v27 = vld [vmem:[%s525_s3 + $0x38] sm:$0xff]  ;;  %v19_v29 = vld [vmem:[%s524_s2 + $0x8] sm:$0xff]  ;;  %vm208_vm2 = vcmask 130048  }
   0xa   :  { %347 = vmatprep.subr.bf16.mxu0 %v346_v18  ;;  %v364_v28 = vpack.c.bf16 %v118_v27, %v117_v26  ;;  %v110_v30 = vld [vmem:[%s523_s1] sm:$0xf]  ;;  %v203_v38 = vshrl.u32 %v202_v37, 7  ;;  %s414_s1 = smov [#allocation2]  }
   0xb   :  { %359 = vmatpush3.bf16.msra.mxu1 %v358_v21  ;;  %s267_s2 = sshll.u32 %s414_s1, 4  ;;  %s268_s2 = int_to_ptr.vmem [resolvable:$true] %s267_s2 }
   0xc   :  { %360 = vmatprep.subr.bf16.mxu1 %v407_v5  ;;  %v221_v39 = vsub.s32 1, %v203_v38  ;;  %v204_v40 = vsub.s32 0, %v203_v38  ;;  %v238_v43 = vsub.s32 2, %v203_v38  ;;  %v255_v53 = vsub.s32 3, %v203_v38  ;;  %s383_s3 = scalar_lea.vmem %s268_s2, 1024  ;;  %p388_p1 = scmp.lt.s32.totalorder %s268_s2, %s268_s2 }
   0xd   :  { %349 = vmatpush3.bf16.msra.mxu0 %v346_v18  ;;  %p384_p0 = scmp.ne.s32.totalorder %s268_s2, %s383_s3  ;;  %p389_p2 = scmp.lt.s32.totalorder %s383_s3, %s383_s3 }
   0xe   :  { %351 = vmatprep.subr.bf16.mxu0 %v350_v24 }
   0xf   :  { %362 = vmatpush3.bf16.msra.mxu1 %v361_v25  ;;  %p390_p3 = por %p389_p2, %p388_p1 }
  0x10   :  { %363 = vmatprep.subr.bf16.mxu1 %v407_v5 }
  0x11   :  { %353 = vmatpush3.bf16.msra.mxu0 %v350_v24  ;;  %p391_p4 = pnand %p390_p3, %p384_p0 }
  0x13   :  { %365 = vmatpush3.bf16.msra.mxu1 %v364_v28 }
  0x14   :  { %317 = vmatmul.mubr.msk.f32.vlgmr.msra.gmra.mrb[0].mxu0 %vm28_vm0, %v19_v29 }
  0x16   :  { %336 = vmatmul.mubr.msk.f32.vlgmr.msra.gmra.mrb[0].mxu1 %vm28_vm0, %v110_v30 }
  0xe7   :  { %v318_v31 = vpop.f32.mrb[0].mxu0 }
  0xe8   :  { %216 = vperm.xlu1 %377, %v318_v31   ;;  %199 = vperm.xlu0 %376, %v318_v31   ;;  %v101_v32 = vpop.f32.mrb[1].mxu0 }
  0xe9   :  { %v188_v33 = vpop.f32.mrb[0].mxu1 }
  0xea   :  { %v337_v34 = vpop.f32.mrb[1].mxu1  ;;  %v222_v41 = vrot.slane %v188_v33, %v221_v39  ;;  %v205_v42 = vrot.slane %v188_v33, %v204_v40  ;;  %v239_v48 = vrot.slane %v188_v33, %v238_v43  ;;  %v256_v58 = vrot.slane %v188_v33, %v255_v53 }
  0xec   :  { %378 = vset.pattern.permute.xlu1 %v412_v35  ;;  %194 = vperm.xlu0 %376, %v101_v32  }
  0xed   :  { %233 = vperm.xlu1 %378, %v318_v31  }
  0xf0   :  { %380 = vset.pattern.permute.xlu0 %v412_v35 }
  0xf1   :  { %379 = vset.pattern.permute.xlu1 %v410_v11  ;;  %229 = vperm.xlu0 %380, %v101_v32  }
  0xf2   :  { %212 = vperm.xlu1 %379, %v101_v32  }
  0xf5   :  { %382 = vset.pattern.permute.xlu0 %v413_v36 }
  0xf6   :  { %381 = vset.pattern.permute.xlu1 %v413_v36  ;;  %250 = vperm.xlu0 %382, %v318_v31  }
  0xf7   :  { %246 = vperm.xlu1 %381, %v101_v32  }
 0x167   :  { %v217_v44 = vpop.permute.xlu1 %216  ;;  %v200_v45 = vpop.permute.xlu0 %199 }
 0x168   :  { %v224_v46 = vadd.f32 %v222_v41, %v217_v44  ;;  %v207_v47 = vadd.f32 %v205_v42, %v200_v45 }
 0x16a   :  { %227 = vst.msk [vmem:[#allocation2 + $0x18] sm:$0xff] %vm208_vm2, %v224_v46  ;;  %210 = vst.msk [vmem:[#allocation2 + $0x8] sm:$0xff] %vm208_vm2, %v207_v47 }
 0x16b   :  { %v195_v49 = vpop.permute.xlu0 %194 }
 0x16c   :  { %v206_v50 = vadd.f32 %v205_v42, %v195_v49  ;;  %v234_v51 = vpop.permute.xlu1 %233 }
 0x16d   :  { %v241_v52 = vadd.f32 %v239_v48, %v234_v51 }
 0x16e   :  { %209 = vst.msk [vmem:[#allocation2] sm:$0xff] %vm208_vm2, %v206_v50 }
 0x16f   :  { %244 = vst.msk [vmem:[#allocation2 + $0x28] sm:$0xff] %vm208_vm2, %v241_v52 }
 0x170   :  { %v230_v54 = vpop.permute.xlu0 %229 }
 0x171   :  { %v240_v55 = vadd.f32 %v239_v48, %v230_v54  ;;  %v213_v56 = vpop.permute.xlu1 %212 }
 0x172   :  { %v223_v57 = vadd.f32 %v222_v41, %v213_v56 }
 0x173   :  { %243 = vst.msk [vmem:[#allocation2 + $0x20] sm:$0xff] %vm208_vm2, %v240_v55 }
 0x174   :  { %226 = vst.msk [vmem:[#allocation2 + $0x10] sm:$0xff] %vm208_vm2, %v223_v57 }
 0x175   :  { %v251_v59 = vpop.permute.xlu0 %250 }
 0x176   :  { %v258_v60 = vadd.f32 %v256_v58, %v251_v59  ;;  %v247_v61 = vpop.permute.xlu1 %246 }
 0x177   :  { %v257_v62 = vadd.f32 %v256_v58, %v247_v61 }
 0x178   :  { %261 = vst.msk [vmem:[#allocation2 + $0x38] sm:$0xff] %vm208_vm2, %v258_v60 }
 0x179   :  { %260 = vst.msk [vmem:[#allocation2 + $0x30] sm:$0xff] %vm208_vm2, %v257_v62 }
 0x17a   :  { %394 = shalt.err (!%p391_p4)
}
 0x17b   :  { %s395_s28 = scalar_lea.hbm %s526_s4, 1024 }
 0x17c   :  { %p396_p5 = scmp.ne.s32.totalorder %s526_s4, %s395_s28  ;;  %p399_p6 = scmp.lt.u32.totalorder %s395_s28, %s526_s4 }
 0x17e   :  { %p401_p7 = pnand %p399_p6, %p396_p5 }
 0x180   :  { %404 = shalt.err (!%p401_p7)
}
 0x181   :  { %s415_s7 = smov 128   ;;  %s416_s8 = smov 8  }
 0x182   :  { %273 = dma.vmem_to_hbm [thread:$0]  %s268_s2, 1024, %s526_s4, [#allocation3], %s415_s7, %s415_s7, %s416_s8  }
 0x183   :  { %405 = dma.done.wait [#allocation3], 1024  }
 0x184   :  { %406 = vsyncadd [#allocation3], 4294966272 }
 0x185   :  { %277 = vsyncpa [#allocation3], 1 }

</bundles_post_ra>
